<compile_context>
chip_gen: v7x
topology: tpu7x:2x2x1
jax: 0.10.0
libtpu: 0.0.40
codegen_flags: <defaults>
</compile_context>

<pallas_src>
import functools

import jax
import jax.numpy as jnp
from jax import lax
from jax.experimental import pallas as pl
from jax.experimental.pallas import tpu as pltpu

BN_EPS = 1e-5


def _round_up(x, m):
    return ((x + m - 1) // m) * m


def _tpu_budget():
    """Per-generation (scoped-VMEM limit, edge-tile size)."""
    try:
        info = pltpu.get_tpu_info()
        vmem = int(getattr(info, "vmem_capacity_bytes", 0) or 0)
    except Exception:
        vmem = 0
    if vmem >= 96 * 1024 * 1024:                 # v5e / v6e: 128 MiB physical VMEM
        return 96 * 1024 * 1024, 1024
    return 56 * 1024 * 1024, 512                  # v7x (64 MiB) or unknown: conservative


VMEM_LIMIT_BYTES, E_TILE = _tpu_budget()


def _vmem():
    return pl.BlockSpec(memory_space=pltpu.MemorySpace.VMEM)


def _smem():
    return pl.BlockSpec(memory_space=pltpu.MemorySpace.SMEM)


# ----------------------------- Pallas kernels ------------------------------ #

def _linear_kernel(x_ref, w_ref, b_ref, o_ref, *, act):
    # Small one-shot encoder matmul (node / bond encoder).
    y = jnp.dot(x_ref[...], w_ref[...], preferred_element_type=jnp.float32) + b_ref[...]
    if act:
        y = jnp.maximum(y, 0.0)
    o_ref[...] = y.astype(o_ref.dtype)


def _gen_gather_scatter_kernel(scal_ref, gamma_ref, beta_ref, h_ref, mask_ref, ee_ref,
                               src_ref, dst_ref, z_ref, acc_ref,
                               z_bf_sc, both_sc, *, pre_bn):
    """Stage 1 of a DeeperGCN 'res+' layer. Grid axis = edge tiles (reduction).

    Outputs: z (pre-activation, f32) and acc = [denom | numer] ([N, 2D], f32).
    """
    e = pl.program_id(0)
    d = h_ref.shape[1]

    @pl.when(e == 0)
    def _init():
        h = h_ref[...]
        if pre_bn:
            # masked (padding-aware) training-mode BatchNorm + ReLU
            m = mask_ref[...]                                    # [N, 1]
            n = scal_ref[1]                                      # real node count
            mean = jnp.sum(h * m, axis=0, keepdims=True) / n
            cen = (h - mean) * m
            var = jnp.sum(cen * cen, axis=0, keepdims=True) / n  # biased, like torch BN
            z = (h - mean) * lax.rsqrt(var + BN_EPS) * gamma_ref[...] + beta_ref[...]
            z = jnp.maximum(z, 0.0)
        else:
            z = h
        z_ref[...] = z
        z_bf_sc[...] = z.astype(jnp.bfloat16)     # hoisted bf16 copy (cast once per layer)
        acc_ref[...] = jnp.zeros_like(acc_ref)

    # --- per edge-tile: gather + message + fused softmax scatter ---
    t = scal_ref[0]
    src_bf = src_ref[...].astype(jnp.bfloat16)    # int8 0/1 -> bf16 (exact)
    # msg_e = z[src_e] + edge_emb_e  (bf16 selector matmul, f32 accumulate)
    msg = jnp.dot(src_bf, z_bf_sc[...], preferred_element_type=jnp.float32) + ee_ref[...]
    msg = jnp.maximum(msg, 0.0) + 1e-7            # [E_tile, D], >= 0
    # clamp the exponent: scatter-softmax without max-subtraction is safe for msg >= 0 only
    # while t*msg stays finite in exp; clamping keeps it finite (approximation guard).
    em = jnp.exp(jnp.minimum(t * msg, 60.0))
    # build [em | em*msg] with two half-writes (no lane-axis concatenate materialization)
    both_sc[:, :d] = em.astype(jnp.bfloat16)
    both_sc[:, d:] = (em * msg).astype(jnp.bfloat16)
    dst_bf = dst_ref[...].astype(jnp.bfloat16)    # [E_tile, N] int8 0/1 -> bf16
    # scatter: contract over the edge axis (row-contiguous dst tile, transposed-LHS matmul)
    acc_ref[...] += lax.dot_general(dst_bf, both_sc[...],
                                    dimension_numbers=(((0,), (0,)), ((), ())),
                                    preferred_element_type=jnp.float32)


def _gen_mlp_kernel(z_ref, acc_ref, h_ref, mask_ref, w1_ref, b1_ref, w2_ref, b2_ref,
                    o_ref, *, residual):
    """Stage 2: softmax ratio -> GENConv MLP -> residual -> padded-row masking.

    Grid axis = node tiles ("parallel" -> both v7x TensorCores).
    """
    d = z_ref.shape[1]
    denom = acc_ref[:, :d]
    numer = acc_ref[:, d:]
    # zero in-degree nodes: numer == 0, clamp keeps the divide finite -> aggr == 0
    aggr = numer * pl.reciprocal(jnp.maximum(denom, 1e-16), approx=True)
    zin = (z_ref[...] + aggr).astype(jnp.bfloat16)           # GENConv: mlp(x + aggr)
    mid = jnp.dot(zin, w1_ref[...], preferred_element_type=jnp.float32) + b1_ref[...]
    mid = jnp.maximum(mid, 0.0).astype(jnp.bfloat16)
    out = jnp.dot(mid, w2_ref[...], preferred_element_type=jnp.float32) + b2_ref[...]
    if residual:
        out = out + h_ref[...]
    # zero padded node rows so garbage never accumulates across layers / poisons masked BN
    o_ref[...] = out * mask_ref[...]


def _bn_pool_head_kernel(scal_ref, gamma_ref, beta_ref, h_ref, mask_ref,
                         pool_ref, cnt_ref, w_ref, b_ref, rf_ref, o_ref):
    """Final BN+ReLU -> mean pool -> linear head -> sigmoid -> beta-blend."""
    beta_mix = scal_ref[0]
    n = scal_ref[1]
    h = h_ref[...]
    m = mask_ref[...]
    mean = jnp.sum(h * m, axis=0, keepdims=True) / n
    cen = (h - mean) * m
    var = jnp.sum(cen * cen, axis=0, keepdims=True) / n
    z = jnp.maximum((h - mean) * lax.rsqrt(var + BN_EPS) * gamma_ref[...]
                    + beta_ref[...], 0.0)
    hg = jnp.dot(pool_ref[...], z.astype(jnp.bfloat16),
                 preferred_element_type=jnp.float32)          # [G, D] (sum pool)
    hg = hg / cnt_ref[...]                                    # exact mean pool
    pred = jnp.dot(hg.astype(jnp.bfloat16), w_ref[...],
                   preferred_element_type=jnp.float32) + b_ref[...]   # [G, T]
    sig = 1.0 / (1.0 + jnp.exp(-pred))                        # exact sigmoid (head)
    o_ref[...] = (1.0 - beta_mix) * sig + beta_mix * rf_ref[...]


# ------------------------------ call wrappers ------------------------------ #

def linear_rows(x, w, b, row_tile, act=False, out_dtype=jnp.float32):
    rows, fin = x.shape
    dout = w.shape[1]
    return pl.pallas_call(
        functools.partial(_linear_kernel, act=act),
        out_shape=jax.ShapeDtypeStruct((rows, dout), out_dtype),
        grid=(rows // row_tile,),
        in_specs=[pl.BlockSpec((row_tile, fin), lambda i: (i, 0)),
                  pl.BlockSpec((fin, dout), lambda i: (0, 0)),
                  pl.BlockSpec((1, dout), lambda i: (0, 0))],
        out_specs=pl.BlockSpec((row_tile, dout), lambda i: (i, 0)),
        compiler_params=pltpu.CompilerParams(
            dimension_semantics=("parallel",),
            vmem_limit_bytes=VMEM_LIMIT_BYTES),
    )(x, w, b.reshape(1, dout))


def gen_layer(h, edge_emb, src_sel, dst_t, node_mask, scal, gamma, beta_bn,
              w1, b1, w2, b2, e_tile, n_tile, *, pre_bn, residual):
    n_pad, d = h.shape
    e_pad = src_sel.shape[0]

    # --- stage 1: pre-BN/ReLU (once) + gather + message + fused softmax scatter ---
    z, acc = pl.pallas_call(
        functools.partial(_gen_gather_scatter_kernel, pre_bn=pre_bn),
        out_shape=(jax.ShapeDtypeStruct((n_pad, d), jnp.float32),
                   jax.ShapeDtypeStruct((n_pad, 2 * d), jnp.float32)),
        grid=(e_pad // e_tile,),
        in_specs=[
            _smem(),                                            # scal [t, n_real]
            pl.BlockSpec((1, d), lambda e: (0, 0)),             # bn gamma
            pl.BlockSpec((1, d), lambda e: (0, 0)),             # bn beta
            pl.BlockSpec((n_pad, d), lambda e: (0, 0)),         # h (VMEM-resident)
            pl.BlockSpec((n_pad, 1), lambda e: (0, 0)),         # node mask
            pl.BlockSpec((e_tile, d), lambda e: (e, 0)),        # edge_emb tile (bf16)
            pl.BlockSpec((e_tile, n_pad), lambda e: (e, 0)),    # src selector tile (int8)
            pl.BlockSpec((e_tile, n_pad), lambda e: (e, 0)),    # dst^T selector tile (int8)
        ],
        out_specs=(pl.BlockSpec((n_pad, d), lambda e: (0, 0)),      # z (resident output)
                   pl.BlockSpec((n_pad, 2 * d), lambda e: (0, 0))),  # [denom | numer]
        scratch_shapes=[pltpu.VMEM((n_pad, d), jnp.bfloat16),       # hoisted z bf16 copy
                        pltpu.VMEM((e_tile, 2 * d), jnp.bfloat16)],  # [em | em*msg]
        compiler_params=pltpu.CompilerParams(
            dimension_semantics=("arbitrary",),                 # edge axis is a reduction
            vmem_limit_bytes=VMEM_LIMIT_BYTES),
    )(scal, gamma, beta_bn, h, node_mask, edge_emb, src_sel, dst_t)

    # --- stage 2: node-parallel softmax ratio + MLP + residual + pad masking ---
    return pl.pallas_call(
        functools.partial(_gen_mlp_kernel, residual=residual),
        out_shape=jax.ShapeDtypeStruct((n_pad, d), jnp.float32),
        grid=(n_pad // n_tile,),
        in_specs=[
            pl.BlockSpec((n_tile, d), lambda i: (i, 0)),        # z tile
            pl.BlockSpec((n_tile, 2 * d), lambda i: (i, 0)),    # acc tile
            pl.BlockSpec((n_tile, d), lambda i: (i, 0)),        # h tile (residual)
            pl.BlockSpec((n_tile, 1), lambda i: (i, 0)),        # node mask tile
            pl.BlockSpec((d, 2 * d), lambda i: (0, 0)),         # w1 (bf16)
            pl.BlockSpec((1, 2 * d), lambda i: (0, 0)),         # b1
            pl.BlockSpec((2 * d, d), lambda i: (0, 0)),         # w2 (bf16)
            pl.BlockSpec((1, d), lambda i: (0, 0)),             # b2
        ],
        out_specs=pl.BlockSpec((n_tile, d), lambda i: (i, 0)),
        compiler_params=pltpu.CompilerParams(
            dimension_semantics=("parallel",),                  # uses both TCs on v7x
            vmem_limit_bytes=VMEM_LIMIT_BYTES),
    )(z, acc, h, node_mask, w1, b1, w2, b2)


def bn_pool_head_blend(scal, gamma, beta_bn, h, node_mask, pool_sel, counts,
                       head_w, head_b, rf):
    g, t_tasks = rf.shape
    return pl.pallas_call(
        _bn_pool_head_kernel,
        out_shape=jax.ShapeDtypeStruct((g, t_tasks), jnp.float32),
        in_specs=[_smem()] + [_vmem()] * 9,
        out_specs=_vmem(),
        compiler_params=pltpu.CompilerParams(vmem_limit_bytes=VMEM_LIMIT_BYTES),
    )(scal, gamma, beta_bn, h, node_mask, pool_sel, counts, head_w, head_b, rf)


# ------------------------------- model glue -------------------------------- #

def deeper_gcn_fp_forward(params, x, edge_index, edge_attr, batch, rf_pred,
                          num_graphs, num_layers):
    n_real, _ = x.shape
    e_real = edge_attr.shape[0]
    d = params["node_w"].shape[1]
    t_tasks = params["head_w"].shape[1]

    # ----- padding so every block shape is (8,128)-legal and grid-divisible -----
    if n_real <= 256:
        n_pad, n_tile = _round_up(n_real, 8), _round_up(n_real, 8)
    else:
        n_pad, n_tile = _round_up(n_real, 256), 256
    e_pad, e_tile = _round_up(max(e_real, 1), E_TILE), E_TILE

    x_p = jnp.pad(x, ((0, n_pad - n_real), (0, 0)))
    ea_p = jnp.pad(edge_attr, ((0, e_pad - e_real), (0, 0)))
    pad_e = e_pad - e_real
    # sentinel index n_pad / num_graphs => padded edges/nodes select nothing
    src_p = jnp.concatenate([edge_index[0], jnp.full((pad_e,), n_pad, edge_index.dtype)])
    dst_p = jnp.concatenate([edge_index[1], jnp.full((pad_e,), n_pad, edge_index.dtype)])
    batch_p = jnp.concatenate([batch, jnp.full((n_pad - n_real,), num_graphs, batch.dtype)])

    node_ids = jnp.arange(n_pad)
    # int8 0/1 selectors, BOTH row-contiguous along the edge axis [E_pad, N_pad]
    src_sel = (src_p[:, None] == node_ids[None, :]).astype(jnp.int8)
    dst_t = (dst_p[:, None] == node_ids[None, :]).astype(jnp.int8)
    gsel = (jnp.arange(num_graphs)[:, None] == batch_p[None, :])
    pool_sel = gsel.astype(jnp.bfloat16)                                   # [G, N_pad]
    counts = jnp.maximum(gsel.sum(axis=1, keepdims=True).astype(jnp.float32), 1.0)
    node_mask = (node_ids < n_real).astype(jnp.float32).reshape(n_pad, 1)
    n_real_f = jnp.float32(n_real)

    # ----- encoders (one-shot, tiny) -----
    h = linear_rows(x_p, params["node_w"], params["node_b"], n_tile)          # node encoder
    edge_emb = linear_rows(ea_p, params["edge_w"], params["edge_b"], e_tile,
                           out_dtype=jnp.bfloat16)                           # bond encoder

    # ----- res+ DeeperGCN: two fused kernels per layer -----
    ones_d = jnp.ones((1, d), jnp.float32)
    zeros_d = jnp.zeros((1, d), jnp.float32)
    for l in range(num_layers):
        lp = params["layers"][l]
        scal = jnp.stack([lp["t"][0], n_real_f]).astype(jnp.float32)
        if l == 0:
            gamma, beta_bn, pre_bn, residual = ones_d, zeros_d, False, False
        else:
            gamma = params["bn_gamma"][l - 1].reshape(1, d)
            beta_bn = params["bn_beta"][l - 1].reshape(1, d)
            pre_bn, residual = True, True
        h = gen_layer(h, edge_emb, src_sel, dst_t, node_mask, scal, gamma, beta_bn,
                      lp["w1"].astype(jnp.bfloat16), lp["b1"].reshape(1, 2 * d),
                      lp["w2"].astype(jnp.bfloat16), lp["b2"].reshape(1, d),
                      e_tile, n_tile, pre_bn=pre_bn, residual=residual)

    # ----- final BN+ReLU + mean pool + head + sigmoid + fingerprint blend -----
    scal_h = jnp.stack([params["beta"][0], n_real_f]).astype(jnp.float32)
    out_gt = bn_pool_head_blend(
        scal_h,
        params["bn_gamma"][num_layers - 1].reshape(1, d),
        params["bn_beta"][num_layers - 1].reshape(1, d),
        h, node_mask, pool_sel, counts,
        params["head_w"].astype(jnp.bfloat16),
        params["head_b"].reshape(1, t_tasks),
        rf_pred.reshape(num_graphs, t_tasks))
    return out_gt.reshape(-1, 1)


def init_params(key, f_node, f_edge, emb, tasks, layers):
    keys = jax.random.split(key, 3 + layers)
    p = {
        "node_w": jax.random.normal(keys[0], (f_node, emb), jnp.float32) * 0.2,
        "node_b": jnp.zeros((emb,), jnp.float32),
        "edge_w": jax.random.normal(keys[1], (f_edge, emb), jnp.float32) * 0.2,
        "edge_b": jnp.zeros((emb,), jnp.float32),
        "head_w": jax.random.normal(keys[2], (emb, tasks), jnp.float32) * 0.2,
        "head_b": jnp.zeros((tasks,), jnp.float32),
        "beta": jnp.array([0.5], jnp.float32),              # DeeperGCNfp.beta
        "layers": [],
        "bn_gamma": [jnp.ones((emb,), jnp.float32) for _ in range(layers)],
        "bn_beta": [jnp.zeros((emb,), jnp.float32) for _ in range(layers)],
    }
    for l in range(layers):
        k1, k2 = jax.random.split(keys[3 + l], 2)
        p["layers"].append({
            "t": jnp.array([0.1], jnp.float32),             # learn_t init
            "w1": jax.random.normal(k1, (emb, 2 * emb), jnp.float32) * 0.2,
            "b1": jnp.zeros((2 * emb,), jnp.float32),
            "w2": jax.random.normal(k2, (2 * emb, emb), jnp.float32) * 0.2,
            "b2": jnp.zeros((emb,), jnp.float32),
        })
    return p


if __name__ == "__main__":
    NUM_TASKS = 1
    EMB_DIM = 128           # lane-dense embedding (multiple of 128)
    NUM_LAYERS = 3
    N_NODES = 48
    N_EDGES = 160
    N_GRAPHS = 4
    F_NODE = 8
    F_EDGE = 4

    key = jax.random.PRNGKey(0)
    kp, kx, ks, kd, ke, kr = jax.random.split(key, 6)

    params = init_params(kp, F_NODE, F_EDGE, EMB_DIM, NUM_TASKS, NUM_LAYERS)

    x = jax.random.normal(kx, (N_NODES, F_NODE), jnp.float32)
    src = jax.random.randint(ks, (N_EDGES,), 0, N_NODES)
    dst = jax.random.randint(kd, (N_EDGES,), 0, N_NODES)
    edge_index = jnp.stack([src, dst], axis=0)                      # [2, E]
    edge_attr = jax.random.normal(ke, (N_EDGES, F_EDGE), jnp.float32)
    batch = jnp.repeat(jnp.arange(N_GRAPHS), N_NODES // N_GRAPHS)   # [N], sorted
    rf_pred = jax.random.uniform(kr, (N_GRAPHS,), jnp.float32)      # fingerprint preds

    out = deeper_gcn_fp_forward(params, x, edge_index, edge_attr, batch, rf_pred,
                                num_graphs=N_GRAPHS, num_layers=NUM_LAYERS)
    out = jax.block_until_ready(out)

    assert out.shape == (N_GRAPHS * NUM_TASKS, 1)
    assert bool(jnp.all(jnp.isfinite(out)))
    print("KERNEL_OK")
</pallas_src>

<mosaic_0001>
module attributes {stable_mosaic.version = 11 : i64} {
  func.func @_linear_kernel(%arg0: i32, %arg1: memref<48x8xf32, #tpu.memory_space<vmem>>, %arg2: memref<8x128xf32, #tpu.memory_space<vmem>>, %arg3: memref<1x128xf32, #tpu.memory_space<vmem>>, %arg4: memref<48x128xf32, #tpu.memory_space<vmem>>) attributes {dimension_semantics = [#tpu.dimension_semantics<parallel>], iteration_bounds = array<i64: 1>, scalar_prefetch = 0 : i64, scratch_operands = 0 : i64, tpu.core_type = #tpu.core_type<tc>, window_params = [{transform_indices = @transform_0, window_bounds = array<i64: 48, 8>}, {pipeline_mode = #tpu.pipeline_mode<synchronous>, transform_indices = @transform_1, window_bounds = array<i64: 8, 128>}, {pipeline_mode = #tpu.pipeline_mode<synchronous>, transform_indices = @transform_2, window_bounds = array<i64: 1, 128>}, {transform_indices = @transform_3, window_bounds = array<i64: 48, 128>}]} {
    %c0 = arith.constant 0 : index
    %c0_0 = arith.constant 0 : index
    %0 = vector.load %arg1[%c0, %c0_0] : memref<48x8xf32, #tpu.memory_space<vmem>>, vector<48x8xf32>
    %c0_1 = arith.constant 0 : index
    %c0_2 = arith.constant 0 : index
    %1 = vector.load %arg2[%c0_1, %c0_2] : memref<8x128xf32, #tpu.memory_space<vmem>>, vector<8x128xf32>
    %cst = arith.constant dense<0.000000e+00> : vector<48x128xf32>
    %2 = tpu.matmul %0, %1, %cst {dimension_numbers = #tpu.dot_dimension_numbers<[1], [0], [0], [1], [0, 0, 1, 1], [], []>} : vector<48x8xf32>, vector<8x128xf32>, vector<48x128xf32> -> vector<48x128xf32>
    %c0_3 = arith.constant 0 : index
    %c0_4 = arith.constant 0 : index
    %3 = vector.load %arg3[%c0_3, %c0_4] : memref<1x128xf32, #tpu.memory_space<vmem>>, vector<1x128xf32>
    %4 = vector.broadcast %3 : vector<1x128xf32> to vector<48x128xf32>
    %5 = arith.addf %2, %4 : vector<48x128xf32>
    %c0_5 = arith.constant 0 : index
    %c0_6 = arith.constant 0 : index
    %6 = vector.load %arg4[%c0_5, %c0_6] : memref<48x128xf32, #tpu.memory_space<vmem>>, vector<48x128xf32>
    tpu.vector_store %arg4[%c0_5, %c0_6], %5 {strides = array<i32>} : memref<48x128xf32, #tpu.memory_space<vmem>>, vector<48x128xf32>,
    return
  }
  func.func @transform_0(%arg0: i32) -> (i32, i32) {
    %c0_i32 = arith.constant 0 : i32
    %c0_i32_0 = arith.constant 0 : i32
    return %arg0, %c0_i32 : i32, i32
  }
  func.func @transform_1(%arg0: i32) -> (i32, i32) {
    %c0_i32 = arith.constant 0 : i32
    %c0_i32_0 = arith.constant 0 : i32
    %c0_i32_1 = arith.constant 0 : i32
    return %c0_i32, %c0_i32_0 : i32, i32
  }
  func.func @transform_2(%arg0: i32) -> (i32, i32) {
    %c0_i32 = arith.constant 0 : i32
    %c0_i32_0 = arith.constant 0 : i32
    %c0_i32_1 = arith.constant 0 : i32
    return %c0_i32, %c0_i32_0 : i32, i32
  }
  func.func @transform_3(%arg0: i32) -> (i32, i32) {
    %c0_i32 = arith.constant 0 : i32
    %c0_i32_0 = arith.constant 0 : i32
    return %arg0, %c0_i32 : i32, i32
  }
}

</mosaic_0001>

<bundles_post_ra>
// kernel: tpu_custom_call.1
= control target key start
LH: loop header
LB: loop body
LE: loop exit
PB: predicated region body
PF: predicated region fallthrough
CT: control target
= control target key end

     0   :  { %vm29_vm0 = vcmask 64512   ;;  %s284_s0 = inlined_call_operand.vmem [shape: f32[48,8], index: 0, kind: input, shape index: {}]   ;;  %s285_s1 = inlined_call_operand.vmem [shape: f32[8,128], index: 1, kind: input, shape index: {}]   ;;  %s286_s2 = inlined_call_operand.vmem [shape: f32[1,128], index: 2, kind: input, shape index: {}]   ;;  %s287_s3 = inlined_call_operand.hbm [shape: f32[48,128], index: 3, kind: output, shape index: {}]  }
   0x1   :  { %v21_v0 = vld [vmem:[%s285_s1] sm:$0xff]  ;;  %v17_v1 = vld [vmem:[%s284_s0 + $0x10] sm:$0xff]  ;;  %v18_v2 = vld [vmem:[%s284_s0 + $0x18] sm:$0xff] }
   0x2   :  { %190 = vmatprep.subr.mxu1 %v21_v0  ;;  %184 = vmatprep.mubr.msk.f32.mxu1 %vm29_vm0, %v17_v1  ;;  %v15_v3 = vld [vmem:[%s284_s0] sm:$0xff]  ;;  %v16_v5 = vld [vmem:[%s284_s0 + $0x8] sm:$0xff] }
   0x3   :  { %v19_v4 = vld [vmem:[%s284_s0 + $0x20] sm:$0xff]  ;;  %191 = vmatpush3.msra.mxu1 %v21_v0  ;;  %179 = vmatprep.subr.mxu0 %v21_v0 }
   0x4   :  { %8 = vsyncpa [#allocation3], 0  ;;  %185 = vmatmul.mubr.msk.f32.vlgmr.msra.gmra.mrb[0].mxu1 %vm29_vm0, %v18_v2  ;;  %180 = vmatpush3.msra.mxu0 %v21_v0  ;;  %v20_v6 = vld [vmem:[%s284_s0 + $0x28] sm:$0xff]  ;;  %v165_v7 = vld [vmem:[%s286_s2] ss:$0 sm:$0xff]  ;;  %s219_s27 = smov [#allocation2]  }
   0x5   :  { %181 = vmatprep.mubr.msk.f32.mxu0 %vm29_vm0, %v15_v3  ;;  %187 = vmatprep.mubr.msk.f32.mxu1 %vm29_vm0, %v19_v4  ;;  %s154_s28 = sshll.u32 %s219_s27, 4  ;;  %s155_s28 = int_to_ptr.vmem [resolvable:$true] %s154_s28 }
   0x6   :  { %182 = vmatmul.mubr.msk.f32.vlgmr.msra.gmra.mrb[0].mxu0 %vm29_vm0, %v16_v5  ;;  %s195_s0 = scalar_lea.vmem %s155_s28, 768  ;;  %p200_p1 = scmp.lt.s32.totalorder %s155_s28, %s155_s28 }
   0x7   :  { %p196_p0 = scmp.ne.s32.totalorder %s155_s28, %s195_s0  ;;  %p201_p2 = scmp.lt.s32.totalorder %s195_s0, %s195_s0 }
   0x8   :  { %188 = vmatmul.mubr.msk.f32.gmra.mrb[2].mxu1 %vm29_vm0, %v20_v6 }
   0x9   :  { %p202_p3 = por %p201_p2, %p200_p1 }
   0xb   :  { %p203_p4 = pnand %p202_p3, %p196_p0 }
  0xd7   :  { %v186_v8 = vpop.f32.mrb[0].mxu1 }
  0xd8   :  { %v130_v9 = vadd.f32 %v186_v8, %v165_v7  ;;  %v124_v10 = vpop.f32.mrb[1].mxu1 }
  0xd9   :  { %v125_v11 = vadd.f32 %v165_v7, %v124_v10  ;;  %v183_v12 = vpop.f32.mrb[0].mxu0 }
  0xda   :  { %146 = vst [vmem:[#allocation2 + $0x18] sm:$0xff] %v130_v9  ;;  %v120_v13 = vadd.f32 %v183_v12, %v165_v7  ;;  %v114_v14 = vpop.f32.mrb[1].mxu0 }
  0xdb   :  { %145 = vst [vmem:[#allocation2 + $0x10] sm:$0xff] %v125_v11  ;;  %v115_v15 = vadd.f32 %v165_v7, %v114_v14  ;;  %v189_v16 = vpop.f32.mrb[2].mxu1 }
  0xdc   :  { %144 = vst [vmem:[#allocation2 + $0x8] sm:$0xff] %v120_v13  ;;  %v140_v17 = vadd.f32 %v189_v16, %v165_v7  ;;  %v134_v18 = vpop.f32.mrb[3].mxu1 }
  0xdd   :  { %143 = vst [vmem:[#allocation2] sm:$0xff] %v115_v15  ;;  %v135_v19 = vadd.f32 %v165_v7, %v134_v18 }
  0xde   :  { %148 = vst [vmem:[#allocation2 + $0x28] sm:$0xff] %v140_v17 }
  0xdf   :  { %147 = vst [vmem:[#allocation2 + $0x20] sm:$0xff] %v135_v19 }
  0xe0   :  { %206 = shalt.err (!%p203_p4)
}
  0xe1   :  { %s207_s30 = scalar_lea.hbm %s287_s3, 768 }
  0xe2   :  { %p208_p5 = scmp.ne.s32.totalorder %s287_s3, %s207_s30  ;;  %p211_p6 = scmp.lt.u32.totalorder %s207_s30, %s287_s3 }
  0xe4   :  { %p213_p7 = pnand %p211_p6, %p208_p5 }
  0xe6   :  { %216 = shalt.err (!%p213_p7)
}
  0xe7   :  { %s220_s8 = smov 128   ;;  %s221_s9 = smov 8  }
  0xe8   :  { %160 = dma.vmem_to_hbm [thread:$0]  %s155_s28, 768, %s287_s3, [#allocation3], %s220_s8, %s220_s8, %s221_s9  }
  0xe9   :  { %217 = dma.done.wait [#allocation3], 768  }
  0xea   :  { %218 = vsyncadd [#allocation3], 4294966528 }
  0xeb   :  { %164 = vsyncpa [#allocation3], 1 }

</bundles_post_ra>
